<compile_context>
chip_gen: v7x
topology: tpu7x:2x2x1
jax: 0.10.0
libtpu: 0.0.40
codegen_flags: <defaults>
</compile_context>

<pallas_src>
import functools

import jax
import jax.numpy as jnp
from jax import lax
from jax.experimental import pallas as pl
from jax.experimental.pallas import tpu as pltpu


_VMEM_LIMIT = 48 * 1024 * 1024  # fits v7x (64 MiB/TC); v5e/v6e have 128 MiB.

# contract last ('in' or 'rank') axis of both operands -> no in-kernel transposes
_CONTRACT_LAST = (((1,), (1,)), ((), ()))


def _round_up(n: int, m: int) -> int:
    return ((n + m - 1) // m) * m


def _pad2(a, p0: int, p1: int):
    s0, s1 = a.shape
    if s0 == p0 and s1 == p1:
        return a
    return jnp.pad(a, ((0, p0 - s0), (0, p1 - s1)))


# --------------------------------------------------------------------------- #
# Pass 1: per-'in'-column scale = m * rsqrt(||W + alpha*(A@B).T||^2 over 'out')
# --------------------------------------------------------------------------- #
def _make_scale_kernel(alpha: float):
    def scale_kernel(w_ref, at_ref, bt_ref, m_ref, scale_ref, ssq_ref):
        o = pl.program_id(1)

        @pl.when(o == 0)
        def _():
            ssq_ref[...] = jnp.zeros_like(ssq_ref)

        # lora.T tile = B.T @ A.T -> (to, tk); rank is tiny so this is cheap.
        lora_t = jnp.dot(bt_ref[...], at_ref[...],
                         preferred_element_type=jnp.float32)
        # W streamed as bf16 (bandwidth), numerator / ssq accumulated in f32.
        num = w_ref[...].astype(jnp.float32) + alpha * lora_t        # (to, tk)
        ssq_ref[...] += jnp.sum(num * num, axis=0, keepdims=True)

        @pl.when(o == pl.num_programs(1) - 1)
        def _():
            # rsqrt goes to the EUP slot; multiply is a (1, tk) VPU op.
            scale_ref[...] = m_ref[...] * lax.rsqrt(ssq_ref[...])

    return scale_kernel


@functools.partial(jax.jit, static_argnames=("alpha", "to", "tk"))
def compute_dora_scale(W, A, B, m, alpha, *, to: int = 512, tk: int = 512):
    """scale[0, i] = m[0, i] / ||W[:, i] + alpha*(A@B).T[:, i]||_2 -> (1, in) f32.

    Only changes when W/A/B/m change: compute once per weight update and pass it
    to linear_with_dora() to avoid re-streaming the full W every forward.
    """
    f32 = jnp.float32
    out_dim, in_dim = W.shape
    rank = A.shape[1]

    pin = _round_up(in_dim, 128)
    tk = min(tk, pin)
    pin = _round_up(pin, tk)
    pout = _round_up(out_dim, 128)
    to = min(to, pout)
    pout = _round_up(pout, to)

    Wb = _pad2(W.astype(jnp.bfloat16), pout, pin)          # big operand: bf16
    At = _pad2(A.T.astype(f32), rank, pin)                 # (r, in)  tiny: f32
    Bt = _pad2(B.T.astype(f32), pout, rank)                # (out, r) tiny: f32
    mp = _pad2(jnp.reshape(m, (1, in_dim)).astype(f32), 1, pin)

    scale_p = pl.pallas_call(
        _make_scale_kernel(float(alpha)),
        out_shape=jax.ShapeDtypeStruct((1, pin), f32),
        grid_spec=pltpu.PrefetchScalarGridSpec(
            num_scalar_prefetch=0,
            grid=(pin // tk, pout // to),              # 'out' axis = reduction
            in_specs=[
                pl.BlockSpec((to, tk), lambda i, o: (o, i)),     # W (bf16)
                pl.BlockSpec((rank, tk), lambda i, o: (0, i)),   # A^T
                pl.BlockSpec((to, rank), lambda i, o: (o, 0)),   # B^T
                pl.BlockSpec((1, tk), lambda i, o: (0, i)),      # m
            ],
            out_specs=pl.BlockSpec((1, tk), lambda i, o: (0, i)),
            scratch_shapes=[pltpu.VMEM((1, tk), f32)],
        ),
        compiler_params=pltpu.CompilerParams(
            dimension_semantics=("parallel", "arbitrary"),
            vmem_limit_bytes=_VMEM_LIMIT),
        cost_estimate=pl.CostEstimate(
            flops=2 * pout * pin * rank + 3 * pout * pin,
            transcendentals=pin,
            bytes_accessed=2 * pout * pin + 4 * pin),
    )(Wb, At, Bt, mp)

    # padded 'in' columns hold garbage (rsqrt(0)); slice them away here.
    return scale_p[:, :in_dim] if pin != in_dim else scale_p


# --------------------------------------------------------------------------- #
# Pass 2: out = (x + x*scale) @ W.T + alpha*((x*scale) @ A) @ B + 2*b
# --------------------------------------------------------------------------- #
def _make_main_kernel(alpha: float):
    def main_kernel(x_ref, s_ref, w_ref, at_ref, bt_ref, b2_ref, o_ref, xsa_ref):
        k = pl.program_id(2)

        @pl.when(k == 0)
        def _():
            o_ref[...] = jnp.zeros_like(o_ref)      # f32 output = accumulator
            xsa_ref[...] = jnp.zeros_like(xsa_ref)

        # Elementwise in f32 (v5e VPU has no bf16 path); bf16 only for the MXU.
        xf = x_ref[...].astype(jnp.float32)          # (tb, tk)
        xs = xf * s_ref[...]                         # (tb, tk) * (1, tk)

        # (x + xs) @ W_tile.T : contract over 'in' (no transpose materialized).
        o_ref[...] += lax.dot_general(
            (xf + xs).astype(jnp.bfloat16), w_ref[...],
            dimension_numbers=_CONTRACT_LAST,
            preferred_element_type=jnp.float32)
        # xs @ A : A stored as (rank, in), contract over 'in'.
        xsa_ref[...] += lax.dot_general(
            xs.astype(jnp.bfloat16), at_ref[...],
            dimension_numbers=_CONTRACT_LAST,
            preferred_element_type=jnp.float32)

        @pl.when(k == pl.num_programs(2) - 1)
        def _():
            # (xs @ A) @ B : B stored as (out, rank) f32, contract over 'rank'.
            lora_out = lax.dot_general(
                xsa_ref[...], bt_ref[...],
                dimension_numbers=_CONTRACT_LAST,
                preferred_element_type=jnp.float32)
            o_ref[...] += alpha * lora_out + b2_ref[...]   # bias pre-doubled

    return main_kernel


@functools.partial(jax.jit, static_argnames=("alpha", "tb", "to", "tk"))
def linear_with_dora(x, W, b, A, B, m, alpha, scale=None,
                     *, tb: int = 512, to: int = 512, tk: int = 1024):
    """x: (batch, in), W: (out, in), b: (out,), A: (in, r), B: (r, out), m: (1, in).

    `scale` may be the precomputed output of compute_dora_scale(); if None it is
    computed here (costs one extra streaming pass over W).
    """
    f32 = jnp.float32
    bf16 = jnp.bfloat16
    batch, in_dim = x.shape
    out_dim = W.shape[0]
    rank = A.shape[1]

    if scale is None:
        scale = compute_dora_scale(W, A, B, m, alpha)
    scale = jnp.reshape(scale, (1, in_dim)).astype(f32)

    # ---- padded extents / tile clamping (all static Python) ----------------
    pb = _round_up(batch, 8)
    tb = min(tb, pb)
    pb = _round_up(pb, tb)

    pin = _round_up(in_dim, 128)
    tk = min(tk, pin)
    pin = _round_up(pin, tk)

    pout = _round_up(out_dim, 128)
    to = min(to, pout)
    pout = _round_up(pout, to)

    # v7x megacore: 2 TensorCores shard the 'parallel' axes. If batch fits a
    # single block, split the 'out' axis so both cores get work.
    if pb // tb < 2 and pout // to < 2:
        half = pout // 2
        if half >= 128 and half % 128 == 0:
            to = half

    # ---- operand layout: bf16 MXU feeds, f32 wherever anything accumulates --
    xb = _pad2(x.astype(bf16), pb, pin)
    Wb = _pad2(W.astype(bf16), pout, pin)
    At = _pad2(A.T.astype(bf16), rank, pin)                  # (r, in)
    Bt = _pad2(B.T.astype(f32), pout, rank)                  # (out, r) tiny: f32
    sp = _pad2(scale, 1, pin)                                # zero pad -> xs pad = 0
    b2 = _pad2(2.0 * jnp.reshape(b, (1, out_dim)).astype(f32), 1, pout)

    out_p = pl.pallas_call(
        _make_main_kernel(float(alpha)),
        out_shape=jax.ShapeDtypeStruct((pb, pout), f32),
        grid_spec=pltpu.PrefetchScalarGridSpec(
            num_scalar_prefetch=0,
            grid=(pb // tb, pout // to, pin // tk),      # K ('in') reduction last
            in_specs=[
                pl.BlockSpec((tb, tk), lambda bi, oj, kk: (bi, kk)),   # x (bf16)
                pl.BlockSpec((1, tk), lambda bi, oj, kk: (0, kk)),     # scale (f32)
                pl.BlockSpec((to, tk), lambda bi, oj, kk: (oj, kk)),   # W (bf16)
                pl.BlockSpec((rank, tk), lambda bi, oj, kk: (0, kk)),  # A^T (bf16)
                pl.BlockSpec((to, rank), lambda bi, oj, kk: (oj, 0)),  # B^T (f32)
                pl.BlockSpec((1, to), lambda bi, oj, kk: (0, oj)),     # 2*bias (f32)
            ],
            out_specs=pl.BlockSpec((tb, to), lambda bi, oj, kk: (bi, oj)),
            scratch_shapes=[pltpu.VMEM((tb, rank), f32)],  # xs @ A accumulator
        ),
        compiler_params=pltpu.CompilerParams(
            dimension_semantics=("parallel", "parallel", "arbitrary"),
            vmem_limit_bytes=_VMEM_LIMIT),
        cost_estimate=pl.CostEstimate(
            flops=(2 * pb * pin * pout + 2 * pb * pin * rank
                   + 2 * pb * rank * pout),
            transcendentals=0,
            bytes_accessed=2 * pb * pin + 2 * pout * pin + 4 * pb * pout),
    )(xb, sp, Wb, At, Bt, b2)

    if pb != batch or pout != out_dim:
        out_p = out_p[:batch, :out_dim]
    return out_p


def reference(x, W, b, A, B, m, alpha):
    linear_out = x @ W.T + b
    lora = A @ B
    numerator = W + alpha * lora.T
    denom = jnp.linalg.norm(numerator, axis=0, keepdims=True)
    new_w = m * (numerator / denom)
    dora_out = x @ new_w.T + b
    return linear_out + dora_out


if __name__ == "__main__":
    key = jax.random.PRNGKey(0)
    batch, in_dim, out_dim, rank, alpha = 8, 32, 32, 4, 2.0

    k_x, k_w, k_b, k_a, k_bm = jax.random.split(key, 5)
    x = jax.random.normal(k_x, (batch, in_dim), dtype=jnp.float32)

    # nn.Linear parameters (deterministic synthetic init)
    W = jax.random.normal(k_w, (out_dim, in_dim), dtype=jnp.float32) * 0.1
    b = jax.random.normal(k_b, (out_dim,), dtype=jnp.float32) * 0.1

    # LoRALayer parameters: A ~ N(0, 1/sqrt(rank)); B nonzero here to exercise
    # the LoRA path (the module's __init__ uses zeros, which is also supported).
    A = jax.random.normal(k_a, (in_dim, rank), dtype=jnp.float32) / jnp.sqrt(rank)
    B = jax.random.normal(k_bm, (rank, out_dim), dtype=jnp.float32) * 0.1

    # m = ||W||_2 over dim=0, keepdim -> (1, in_dim)
    m = jnp.linalg.norm(W, axis=0, keepdims=True)

    # Recommended path: compute the DoRA column scale once per weight update,
    # then reuse it for every forward (skips a full W read per call).
    scale = jax.block_until_ready(compute_dora_scale(W, A, B, m, alpha))
    out = jax.block_until_ready(linear_with_dora(x, W, b, A, B, m, alpha, scale))

    # Self-contained path (scale computed internally) also supported.
    out2 = jax.block_until_ready(linear_with_dora(x, W, b, A, B, m, alpha))

    ref = reference(x, W, b, A, B, m, alpha)
    assert out.shape == (batch, out_dim)
    # bf16 MXU operands with f32 accumulation -> ~1e-2-level absolute error.
    assert jnp.allclose(out, ref, atol=5e-2, rtol=5e-2), "mismatch vs reference"
    assert jnp.allclose(out2, ref, atol=5e-2, rtol=5e-2), "mismatch vs reference (internal scale)"

    print("KERNEL_OK")
</pallas_src>

<mosaic_0001>
module attributes {stable_mosaic.version = 11 : i64} {
  func.func @scale_kernel(%arg0: i32, %arg1: i32, %arg2: memref<128x128xbf16, #tpu.memory_space<vmem>>, %arg3: memref<4x128xf32, #tpu.memory_space<vmem>>, %arg4: memref<128x4xf32, #tpu.memory_space<vmem>>, %arg5: memref<1x128xf32, #tpu.memory_space<vmem>>, %arg6: memref<1x128xf32, #tpu.memory_space<vmem>>, %arg7: memref<1x128xf32, #tpu.memory_space<vmem>>) attributes {dimension_semantics = [#tpu.dimension_semantics<parallel>, #tpu.dimension_semantics<arbitrary>], iteration_bounds = array<i64: 1, 1>, scalar_prefetch = 0 : i64, scratch_operands = 1 : i64, tpu.core_type = #tpu.core_type<tc>, window_params = [{transform_indices = @transform_0, window_bounds = array<i64: 128, 128>}, {transform_indices = @transform_1, window_bounds = array<i64: 4, 128>}, {transform_indices = @transform_2, window_bounds = array<i64: 128, 4>}, {transform_indices = @transform_3, window_bounds = array<i64: 1, 128>}, {transform_indices = @transform_4, window_bounds = array<i64: 1, 128>}]} {
    %c0_i32 = arith.constant 0 : i32
    %0 = arith.cmpi eq, %arg1, %c0_i32 : i32
    %1 = arith.extui %0 : i1 to i32
    %c0_i32_0 = arith.constant 0 : i32
    %2 = arith.cmpi ne, %1, %c0_i32_0 : i32
    scf.if %2 {
      %cst_14 = arith.constant 0.000000e+00 : f32
      %20 = vector.broadcast %cst_14 : f32 to vector<1x128xf32>
      %c0_15 = arith.constant 0 : index
      %c0_16 = arith.constant 0 : index
      %21 = vector.load %arg7[%c0_15, %c0_16] : memref<1x128xf32, #tpu.memory_space<vmem>>, vector<1x128xf32>
      tpu.vector_store %arg7[%c0_15, %c0_16], %20 {strides = array<i32>} : memref<1x128xf32, #tpu.memory_space<vmem>>, vector<1x128xf32>,
    } else {
    }
    %c0 = arith.constant 0 : index
    %c0_1 = arith.constant 0 : index
    %3 = vector.load %arg4[%c0, %c0_1] : memref<128x4xf32, #tpu.memory_space<vmem>>, vector<128x4xf32>
    %c0_2 = arith.constant 0 : index
    %c0_3 = arith.constant 0 : index
    %4 = vector.load %arg3[%c0_2, %c0_3] : memref<4x128xf32, #tpu.memory_space<vmem>>, vector<4x128xf32>
    %cst = arith.constant dense<0.000000e+00> : vector<128x128xf32>
    %5 = tpu.matmul %3, %4, %cst {dimension_numbers = #tpu.dot_dimension_numbers<[1], [0], [0], [1], [0, 0, 1, 1], [], []>} : vector<128x4xf32>, vector<4x128xf32>, vector<128x128xf32> -> vector<128x128xf32>
    %c0_4 = arith.constant 0 : index
    %c0_5 = arith.constant 0 : index
    %6 = vector.load %arg2[%c0_4, %c0_5] : memref<128x128xbf16, #tpu.memory_space<vmem>>, vector<128x128xbf16>
    %7 = arith.extf %6 : vector<128x128xbf16> to vector<128x128xf32>
    %cst_6 = arith.constant 2.000000e+00 : f32
    %8 = vector.broadcast %cst_6 : f32 to vector<128x128xf32>
    %9 = arith.mulf %8, %5 : vector<128x128xf32>
    %10 = arith.addf %7, %9 : vector<128x128xf32>
    %c0_7 = arith.constant 0 : index
    %c0_8 = arith.constant 0 : index
    %11 = vector.load %arg7[%c0_7, %c0_8] : memref<1x128xf32, #tpu.memory_space<vmem>>, vector<1x128xf32>
    %12 = arith.mulf %10, %10 : vector<128x128xf32>
    %cst_9 = arith.constant dense<0.000000e+00> : vector<128xf32>
    %13 = vector.multi_reduction <add>, %12, %cst_9 [0] : vector<128x128xf32> to vector<128xf32>
    %14 = vector.shape_cast %13 : vector<128xf32> to vector<1x128xf32>
    %15 = arith.addf %11, %14 : vector<1x128xf32>
    %c0_10 = arith.constant 0 : index
    %c0_11 = arith.constant 0 : index
    %16 = vector.load %arg7[%c0_10, %c0_11] : memref<1x128xf32, #tpu.memory_space<vmem>>, vector<1x128xf32>
    tpu.vector_store %arg7[%c0_10, %c0_11], %15 {strides = array<i32>} : memref<1x128xf32, #tpu.memory_space<vmem>>, vector<1x128xf32>,
    %c0_i32_12 = arith.constant 0 : i32
    %17 = arith.cmpi eq, %arg1, %c0_i32_12 : i32
    %18 = arith.extui %17 : i1 to i32
    %c0_i32_13 = arith.constant 0 : i32
    %19 = arith.cmpi ne, %18, %c0_i32_13 : i32
    scf.if %19 {
      %c0_14 = arith.constant 0 : index
      %c0_15 = arith.constant 0 : index
      %20 = vector.load %arg5[%c0_14, %c0_15] : memref<1x128xf32, #tpu.memory_space<vmem>>, vector<1x128xf32>
      %c0_16 = arith.constant 0 : index
      %c0_17 = arith.constant 0 : index
      %21 = vector.load %arg7[%c0_16, %c0_17] : memref<1x128xf32, #tpu.memory_space<vmem>>, vector<1x128xf32>
      %22 = math.rsqrt %21 : vector<1x128xf32>
      %23 = arith.mulf %20, %22 : vector<1x128xf32>
      %c0_18 = arith.constant 0 : index
      %c0_19 = arith.constant 0 : index
      %24 = vector.load %arg6[%c0_18, %c0_19] : memref<1x128xf32, #tpu.memory_space<vmem>>, vector<1x128xf32>
      tpu.vector_store %arg6[%c0_18, %c0_19], %23 {strides = array<i32>} : memref<1x128xf32, #tpu.memory_space<vmem>>, vector<1x128xf32>,
    } else {
    }
    return
  }
  func.func @transform_0(%arg0: i32, %arg1: i32) -> (i32, i32) {
    %c0_i32 = arith.constant 0 : i32
    return %arg1, %arg0 : i32, i32
  }
  func.func @transform_1(%arg0: i32, %arg1: i32) -> (i32, i32) {
    %c0_i32 = arith.constant 0 : i32
    %c0_i32_0 = arith.constant 0 : i32
    return %c0_i32, %arg0 : i32, i32
  }
  func.func @transform_2(%arg0: i32, %arg1: i32) -> (i32, i32) {
    %c0_i32 = arith.constant 0 : i32
    %c0_i32_0 = arith.constant 0 : i32
    return %arg1, %c0_i32 : i32, i32
  }
  func.func @transform_3(%arg0: i32, %arg1: i32) -> (i32, i32) {
    %c0_i32 = arith.constant 0 : i32
    %c0_i32_0 = arith.constant 0 : i32
    return %c0_i32, %arg0 : i32, i32
  }
  func.func @transform_4(%arg0: i32, %arg1: i32) -> (i32, i32) {
    %c0_i32 = arith.constant 0 : i32
    %c0_i32_0 = arith.constant 0 : i32
    return %c0_i32, %arg0 : i32, i32
  }
}

</mosaic_0001>

<bundles_post_ra>
// kernel: compute_dora_scale.1
= control target key start
LH: loop header
LB: loop body
LE: loop exit
PB: predicated region body
PF: predicated region fallthrough
CT: control target
= control target key end

     0   :  { %vm89_vm0 = vcmask 1043456   ;;  %vm40_vm1 = vcmask 31744   ;;  %s626_s0 = inlined_call_operand.vmem [shape: bf16[128,128], index: 0, kind: input, shape index: {}]   ;;  %s627_s1 = inlined_call_operand.vmem [shape: f32[4,128], index: 1, kind: input, shape index: {}]   ;;  %s628_s2 = inlined_call_operand.vmem [shape: f32[128,4], index: 2, kind: input, shape index: {}]   ;;  %s629_s3 = inlined_call_operand.vmem [shape: f32[1,128], index: 3, kind: input, shape index: {}]   ;;  %s630_s4 = inlined_call_operand.hbm [shape: f32[1,128], index: 4, kind: output, shape index: {}]  }
   0x1   :  { %v39_v0 = vld [vmem:[%s627_s1] sm:$0xf]  ;;  %v24_v2 = vld [vmem:[%s628_s2 + $0x8] sm:$0xff]  ;;  %v25_v3 = vld [vmem:[%s628_s2 + $0x10] sm:$0xff] }
   0x2   :  { %v23_v1 = vld [vmem:[%s628_s2] sm:$0xff]  ;;  %437 = vmatprep.subr.msk.mxu0 %vm89_vm0, %v39_v0  ;;  %463 = vmatprep.subr.msk.mxu1 %vm89_vm0, %v39_v0  ;;  %v32_v5 = vld [vmem:[%s628_s2 + $0x48] sm:$0xff]  ;;  %v33_v6 = vld [vmem:[%s628_s2 + $0x50] sm:$0xff] }
   0x3   :  { %439 = vmatprep.mubr.msk.f32.mxu0 %vm40_vm1, %v23_v1  ;;  %438 = vmatpush3.msk.msra.mxu0 %vm89_vm0, %v39_v0  ;;  %v31_v4 = vld [vmem:[%s628_s2 + $0x40] sm:$0xff]  ;;  %v26_v7 = vld [vmem:[%s628_s2 + $0x18] sm:$0xff] }
   0x4   :  { %440 = vmatmul.mubr.msk.f32.vlgmr.msra.gmra.mrb[0].mxu0 %vm40_vm1, %v24_v2  ;;  %464 = vmatpush3.msk.msra.mxu1 %vm89_vm0, %v39_v0  ;;  %v27_v8 = vld [vmem:[%s628_s2 + $0x20] sm:$0xff] }
   0x5   :  { %442 = vmatprep.mubr.msk.f32.mxu0 %vm40_vm1, %v25_v3  ;;  %451 = vmatprep.mubr.msk.f32.mxu1 %vm40_vm1, %v31_v4 }
   0x6   :  { %452 = vmatmul.mubr.msk.f32.vlgmr.msra.gmra.mrb[0].mxu1 %vm40_vm1, %v32_v5 }
   0x7   :  { %9 = vsyncpa [#allocation4], 0  ;;  %454 = vmatprep.mubr.msk.f32.mxu1 %vm40_vm1, %v33_v6  ;;  %v34_v9 = vld [vmem:[%s628_s2 + $0x58] sm:$0xff]  ;;  %v35_v10 = vld [vmem:[%s628_s2 + $0x60] sm:$0xff]  ;;  %v493_v17 = vmov 0.0   ;;  %s494_s11 = smov [#allocation3]  }
   0x8   :  { %443 = vmatmul.mubr.msk.f32.gmra.mrb[2].mxu0 %vm40_vm1, %v26_v7  ;;  %v28_v11 = vld [vmem:[%s628_s2 + $0x28] sm:$0xff]  ;;  %v29_v12 = vld [vmem:[%s628_s2 + $0x30] sm:$0xff]  ;;  %v30_v15 = vld [vmem:[%s628_s2 + $0x38] sm:$0xff]  ;;  %22 = vst [vmem:[#allocation2] sm:$0x1] %v493_v17  ;;  %s356_s12 = sshll.u32 %s494_s11, 4  ;;  %s357_s12 = int_to_ptr.vmem [resolvable:$true] %s356_s12 }
   0x9   :  { %445 = vmatprep.mubr.msk.f32.mxu0 %vm40_vm1, %v27_v8  ;;  %v36_v13 = vld [vmem:[%s628_s2 + $0x68] sm:$0xff]  ;;  %v37_v14 = vld [vmem:[%s628_s2 + $0x70] sm:$0xff]  ;;  %v38_v16 = vld [vmem:[%s628_s2 + $0x78] sm:$0xff]  ;;  %s469_s13 = scalar_lea.vmem %s357_s12, 16  ;;  %s473_s14 = scalar_lea.vmem %s357_s12, 32 }
   0xa   :  { %455 = vmatmul.mubr.msk.f32.gmra.mrb[2].mxu1 %vm40_vm1, %v34_v9  ;;  %v382_v18 = vld [vmem:[%s626_s0] sm:$0xff]   ;;  %v413_v24 = vld [vmem:[%s626_s0 + $0x8] sm:$0xff]   ;;  %v414_v33 = vld [vmem:[%s626_s0 + $0x10] sm:$0xff]   ;;  %p470_p0 = scmp.ne.s32.totalorder %s357_s12, %s469_s13  ;;  %p474_p1 = scmp.lt.s32.totalorder %s357_s12, %s357_s12 }
   0xb   :  { %457 = vmatprep.mubr.msk.f32.mxu1 %vm40_vm1, %v35_v10  ;;  %v384_v19 = vunpack.c.h.bf16 %v382_v18  ;;  %v383_v21 = vunpack.c.l.bf16 %v382_v18  ;;  %v388_v31 = vunpack.c.h.bf16 %v413_v24  ;;  %v387_v32 = vunpack.c.l.bf16 %v413_v24  ;;  %v415_v47 = vld [vmem:[%s626_s0 + $0x18] sm:$0xff]   ;;  %v416_v48 = vld [vmem:[%s626_s0 + $0x20] sm:$0xff]   ;;  %v417_v0 = vld [vmem:[%s626_s0 + $0x28] sm:$0xff]   ;;  %p475_p2 = scmp.lt.s32.totalorder %s473_s14, %s469_s13 }
   0xc   :  { %446 = vmatmul.mubr.msk.f32.gmra.mrb[4].mxu0 %vm40_vm1, %v28_v11  ;;  %v392_v40 = vunpack.c.h.bf16 %v414_v33  ;;  %v391_v46 = vunpack.c.l.bf16 %v414_v33  ;;  %v396_v54 = vunpack.c.h.bf16 %v415_v47  ;;  %v395_v55 = vunpack.c.l.bf16 %v415_v47  ;;  %v418_v17 = vld [vmem:[%s626_s0 + $0x30] sm:$0xff]  }
   0xd   :  { %448 = vmatprep.mubr.msk.f32.mxu0 %vm40_vm1, %v29_v12  ;;  %v399_v56 = vunpack.c.l.bf16 %v416_v48  ;;  %v400_v6 = vunpack.c.h.bf16 %v416_v48  ;;  %v403_v10 = vunpack.c.l.bf16 %v417_v0  ;;  %v407_v24 = vunpack.c.l.bf16 %v418_v17  ;;  %p476_p3 = por %p475_p2, %p474_p1 }
   0xe   :  { %458 = vmatmul.mubr.msk.f32.gmra.mrb[4].mxu1 %vm40_vm1, %v36_v13 }
   0xf   :  { %460 = vmatprep.mubr.msk.f32.mxu1 %vm40_vm1, %v37_v14  ;;  %p477_p4 = pnand %p476_p3, %p470_p0 }
  0x10   :  { %449 = vmatmul.mubr.msk.f32.gmra.mrb[6].mxu0 %vm40_vm1, %v30_v15 }
  0x12   :  { %461 = vmatmul.mubr.msk.f32.gmra.mrb[6].mxu1 %vm40_vm1, %v38_v16 }
  0xd7   :  { %v441_v20 = vpop.f32.mrb[0].mxu0 }
  0xd8   :  { %v271_v22 = vmul.f32 2.0, %v441_v20  ;;  %v159_v23 = vpop.f32.mrb[1].mxu0  ;;  %v404_v20 = vunpack.c.h.bf16 %v417_v0 }
  0xd9   :  { %v270_v25 = vmul.f32 2.0, %v159_v23  ;;  %v453_v26 = vpop.f32.mrb[0].mxu1 }
  0xda   :  { %v287_v27 = vadd.f32 %v384_v19, %v271_v22  ;;  %v199_v28 = vpop.f32.mrb[1].mxu1  ;;  %v279_v8 = vmul.f32 2.0, %v453_v26 }
  0xdb   :  { %v286_v29 = vadd.f32 %v383_v21, %v270_v25  ;;  %v444_v30 = vpop.f32.mrb[2].mxu0  ;;  %v278_v57 = vmul.f32 2.0, %v199_v28 }
  0xdc   :  { %v304_v34 = vmul.f32 %v287_v27, %v287_v27  ;;  %v273_v35 = vmul.f32 2.0, %v444_v30  ;;  %v169_v36 = vpop.f32.mrb[3].mxu0  ;;  %v295_v21 = vadd.f32 %v400_v6, %v279_v8 }
  0xdd   :  { %v303_v37 = vmul.f32 %v286_v29, %v286_v29  ;;  %v272_v38 = vmul.f32 2.0, %v169_v36  ;;  %v456_v39 = vpop.f32.mrb[2].mxu1  ;;  %v294_v9 = vadd.f32 %v399_v56, %v278_v57  ;;  %v419_v29 = vld [vmem:[%s626_s0 + $0x38] sm:$0xff]  }
  0xde   :  { %v209_v41 = vpop.f32.mrb[3].mxu1  ;;  %v289_v43 = vadd.f32 %v388_v31, %v273_v35  ;;  %v281_v23 = vmul.f32 2.0, %v456_v39  ;;  %v408_v31 = vunpack.c.h.bf16 %v418_v17  ;;  %v411_v35 = vunpack.c.l.bf16 %v419_v29 }
  0xdf   :  { %v319_v42 = vadd.f32 %v304_v34, %v303_v37  ;;  %v288_v44 = vadd.f32 %v387_v32, %v272_v38  ;;  %v447_v45 = vpop.f32.mrb[4].mxu0  ;;  %v280_v11 = vmul.f32 2.0, %v209_v41  ;;  %v311_v22 = vmul.f32 %v294_v9, %v294_v9 }
  0xe0   :  { %v275_v49 = vmul.f32 2.0, %v447_v45  ;;  %v179_v50 = vpop.f32.mrb[5].mxu0  ;;  %v306_v59 = vmul.f32 %v289_v43, %v289_v43  ;;  %v312_v32 = vmul.f32 %v295_v21, %v295_v21  ;;  %v297_v33 = vadd.f32 %v404_v20, %v281_v23 }
  0xe1   :  { %v305_v51 = vmul.f32 %v288_v44, %v288_v44  ;;  %v274_v52 = vmul.f32 2.0, %v179_v50  ;;  %v459_v53 = vpop.f32.mrb[4].mxu1  ;;  %v296_v27 = vadd.f32 %v403_v10, %v280_v11  ;;  %v412_v43 = vunpack.c.h.bf16 %v419_v29 }
  0xe2   :  { %v219_v58 = vpop.f32.mrb[5].mxu1  ;;  %v291_v61 = vadd.f32 %v392_v40, %v275_v49  ;;  %v283_v34 = vmul.f32 2.0, %v459_v53  ;;  %v314_v41 = vmul.f32 %v297_v33, %v297_v33 }
  0xe3   :  { %v320_v60 = vadd.f32 %v319_v42, %v305_v51  ;;  %v290_v62 = vadd.f32 %v391_v46, %v274_v52  ;;  %v450_v63 = vpop.f32.mrb[6].mxu0  ;;  %v282_v28 = vmul.f32 2.0, %v219_v58  ;;  %v313_v37 = vmul.f32 %v296_v27, %v296_v27 }
  0xe4   :  { %v277_v1 = vmul.f32 2.0, %v450_v63  ;;  %v189_v2 = vpop.f32.mrb[7].mxu0  ;;  %v308_v13 = vmul.f32 %v291_v61, %v291_v61  ;;  %v299_v42 = vadd.f32 %v408_v31, %v283_v34 }
  0xe5   :  { %v307_v3 = vmul.f32 %v290_v62, %v290_v62  ;;  %v321_v4 = vadd.f32 %v320_v60, %v306_v59  ;;  %v276_v5 = vmul.f32 2.0, %v189_v2  ;;  %v462_v7 = vpop.f32.mrb[6].mxu1  ;;  %v298_v38 = vadd.f32 %v407_v24, %v282_v28  ;;  %v302_v62 = vld [vmem:[#allocation2] sm:$0x1] }
  0xe6   :  { %v229_v12 = vpop.f32.mrb[7].mxu1  ;;  %v293_v15 = vadd.f32 %v396_v54, %v277_v1  ;;  %v285_v46 = vmul.f32 2.0, %v462_v7  ;;  %v316_v49 = vmul.f32 %v299_v42, %v299_v42  ;;  %v345_v2 = vld [vmem:[%s629_s3] sm:$0x1] }
  0xe7   :  { %v322_v14 = vadd.f32 %v321_v4, %v307_v3  ;;  %v292_v16 = vadd.f32 %v395_v55, %v276_v5  ;;  %v284_v40 = vmul.f32 2.0, %v229_v12  ;;  %v315_v45 = vmul.f32 %v298_v38, %v298_v38 }
  0xe8   :  { %v310_v25 = vmul.f32 %v293_v15, %v293_v15  ;;  %v301_v51 = vadd.f32 %v412_v43, %v285_v46 }
  0xe9   :  { %v309_v18 = vmul.f32 %v292_v16, %v292_v16  ;;  %v323_v19 = vadd.f32 %v322_v14, %v308_v13  ;;  %v300_v47 = vadd.f32 %v411_v35, %v284_v40 }
  0xea   :  { %v318_v53 = vmul.f32 %v301_v51, %v301_v51 }
  0xeb   :  { %v324_v26 = vadd.f32 %v323_v19, %v309_v18  ;;  %v317_v52 = vmul.f32 %v300_v47, %v300_v47 }
  0xed   :  { %v325_v30 = vadd.f32 %v324_v26, %v310_v25 }
  0xef   :  { %v326_v36 = vadd.f32 %v325_v30, %v311_v22 }
  0xf1   :  { %v327_v39 = vadd.f32 %v326_v36, %v312_v32 }
  0xf3   :  { %v328_v44 = vadd.f32 %v327_v39, %v313_v37 }
  0xf5   :  { %v329_v48 = vadd.f32 %v328_v44, %v314_v41 }
  0xf7   :  { %v330_v50 = vadd.f32 %v329_v48, %v315_v45 }
  0xf9   :  { %v331_v54 = vadd.f32 %v330_v50, %v316_v49 }
  0xfb   :  { %v332_v55 = vadd.f32 %v331_v54, %v317_v52 }
  0xfd   :  { %v333_v56 = vadd.f32 %v332_v55, %v318_v53 }
  0xff   :  { %v334_v57 = vrot.slane %v333_v56, 4 }
 0x101   :  { %v335_v58 = vadd.f32 %v334_v57, %v333_v56 }
 0x103   :  { %v336_v59 = vrot.slane %v335_v58, 2 }
 0x105   :  { %v337_v60 = vadd.f32 %v336_v59, %v335_v58 }
 0x107   :  { %v338_v61 = vrot.slane %v337_v60, 1 }
 0x109   :  { %v339_v63 = vadd.f32 %v338_v61, %v337_v60 }
 0x10b   :  { %v340_v0 = vadd.f32 %v339_v63, %v302_v62 }
 0x10d   :  { %341 = vst [vmem:[#allocation2] sm:$0x1] %v340_v0 }
 0x114   :  { %v346_v1 = vld [vmem:[#allocation2] sm:$0x1] }
 0x115   :  { %467 = vrsqrt.f32 %v346_v1 }
 0x11f   :  { %v468_v3 = vpop.eup %467 }
 0x120   :  { %v348_v4 = vmul.f32 %v468_v3, %v345_v2 }
 0x122   :  { %349 = vst [vmem:[#allocation3] sm:$0x1] %v348_v4 }
 0x123   :  { %480 = shalt.err (!%p477_p4)
}
 0x124   :  { %s481_s17 = scalar_lea.hbm %s630_s4, 16 }
 0x125   :  { %p482_p5 = scmp.ne.s32.totalorder %s630_s4, %s481_s17  ;;  %p485_p6 = scmp.lt.u32.totalorder %s481_s17, %s630_s4 }
 0x127   :  { %p487_p7 = pnand %p485_p6, %p482_p5 }
 0x129   :  { %490 = shalt.err (!%p487_p7)
}
 0x12a   :  { %359 = dma.vmem_to_hbm [thread:$0]  %s357_s12, 16, %s630_s4, [#allocation4]  }
 0x12b   :  { %491 = dma.done.wait [#allocation4], 16  }
 0x12c   :  { %492 = vsyncadd [#allocation4], 4294967280 }
 0x12d   :  { %363 = vsyncpa [#allocation4], 1 }

</bundles_post_ra>
